<compile_context>
chip_gen: v5e
topology: v5e:2x2
jax: 0.10.0
libtpu: 0.0.40
codegen_flags: <defaults>
</compile_context>

<pallas_src>
import jax
import jax.numpy as jnp
from jax.experimental import pallas as pl
from jax.experimental.pallas import tpu as pltpu


# ----------------------------------------------------------------------------
# Pallas kernel: fused 1x1 conv (channel matmul) + bias, lane-dense output.
# ----------------------------------------------------------------------------
def _proj_kernel(x_ref, w_ref, b_ref, o_ref):
    # x_ref: (Cin_p, T)  pixels of one batch element (spatial on lanes)
    # w_ref: (Cout, Cin_p), b_ref: (Cout, 1), o_ref: (Cout, T)
    acc = jnp.dot(w_ref[...], x_ref[...], preferred_element_type=jnp.float32)
    o_ref[...] = (acc + b_ref[...]).astype(o_ref.dtype)


def _pick_hw_tile(hw_pad, max_tile=8192):
    # hw_pad is a multiple of 128; find the largest multiple-of-128 divisor
    # not exceeding max_tile (128 always divides, so this terminates).
    t = min(hw_pad, max_tile)
    while hw_pad % t:
        t -= 128
    return t


# ----------------------------------------------------------------------------
# Forward pass: proj (Pallas) + PixelShuffle (layout glue).
# ----------------------------------------------------------------------------
def upsample_forward(x_nchw, w, b, factor):
    """x: (N, Cin, H, W); w: (Cout, Cin); b: (Cout,) -> (N, Cin, H*f, W*f)."""
    N, Cin, H, W = x_nchw.shape
    Cout = w.shape[0]
    assert Cout == Cin * factor * factor

    # ---- flatten spatial, pad to lane width (128) and channels to sublane (8)
    HW = H * W
    HWp = -(-HW // 128) * 128
    Cin_p = -(-Cin // 8) * 8

    xf = x_nchw.reshape(N, Cin, HW)
    if HWp != HW:
        xf = jnp.pad(xf, ((0, 0), (0, 0), (0, HWp - HW)))
    if Cin_p != Cin:
        xf = jnp.pad(xf, ((0, 0), (0, Cin_p - Cin), (0, 0)))
        w_p = jnp.pad(w, ((0, 0), (0, Cin_p - Cin)))
    else:
        w_p = w

    T = _pick_hw_tile(HWp)
    grid = (N, HWp // T)

    cost = pl.CostEstimate(
        flops=2 * N * Cin_p * Cout * HWp,
        transcendentals=0,
        bytes_accessed=4 * (N * Cin_p * HWp + Cin_p * Cout + Cout
                            + N * Cout * HWp),
    )

    y = pl.pallas_call(
        _proj_kernel,
        grid=grid,
        in_specs=[
            # batch dim squeezed; spatial tiled on the lane axis
            pl.BlockSpec((None, Cin_p, T), lambda n, t: (n, 0, t)),
            pl.BlockSpec((Cout, Cin_p), lambda n, t: (0, 0)),
            pl.BlockSpec((Cout, 1), lambda n, t: (0, 0)),
        ],
        out_specs=pl.BlockSpec((None, Cout, T), lambda n, t: (n, 0, t)),
        out_shape=jax.ShapeDtypeStruct((N, Cout, HWp), jnp.float32),
        compiler_params=pltpu.CompilerParams(
            dimension_semantics=("parallel", "parallel")),
        cost_estimate=cost,
    )(xf, w_p, b.reshape(Cout, 1))

    # ---- trim spatial padding, then PixelShuffle(factor) in layout glue:
    #      out[n, c, h*f+i, w*f+j] = y[n, c*f*f + i*f + j, h, w]
    y = y[:, :, :HW].reshape(N, Cout, H, W)
    f = factor
    y = y.reshape(N, Cin, f, f, H, W)
    y = jnp.transpose(y, (0, 1, 4, 2, 5, 3))
    return y.reshape(N, Cin, H * f, W * f)


# ----------------------------------------------------------------------------
if __name__ == "__main__":
    key = jax.random.PRNGKey(0)
    kx, kw, kb = jax.random.split(key, 3)

    N, Cin, H, W = 2, 4, 16, 16
    factor = 2
    Cout = Cin * factor * factor  # = 16

    x = jax.random.normal(kx, (N, Cin, H, W), jnp.float32)
    # xavier_normal_ (gain=1) for the 1x1 conv: std = sqrt(2 / (fan_in+fan_out))
    std = (2.0 / (Cin + Cout)) ** 0.5
    w = std * jax.random.normal(kw, (Cout, Cin), jnp.float32)
    b = 0.1 * jax.random.normal(kb, (Cout,), jnp.float32)

    fwd = jax.jit(lambda xx: upsample_forward(xx, w, b, factor))
    out = jax.block_until_ready(fwd(x))

    # Pure-JAX reference: 1x1 conv + PixelShuffle.
    ref = jnp.einsum("oc,nchw->nohw", w, x) + b[None, :, None, None]
    ref = ref.reshape(N, Cin, factor, factor, H, W)
    ref = jnp.transpose(ref, (0, 1, 4, 2, 5, 3)).reshape(
        N, Cin, H * factor, W * factor)

    assert out.shape == (N, Cin, H * factor, W * factor), out.shape
    assert bool(jnp.all(jnp.isfinite(out)))
    assert bool(jnp.allclose(out, ref, rtol=2e-2, atol=2e-2)), \
        float(jnp.max(jnp.abs(out - ref)))
    print("KERNEL_OK")
</pallas_src>

<mosaic_0001>
module attributes {stable_mosaic.version = 11 : i64} {
  func.func @_proj_kernel(%arg0: i32, %arg1: i32, %arg2: memref<1x8x256xf32, #tpu.memory_space<vmem>>, %arg3: memref<16x8xf32, #tpu.memory_space<vmem>>, %arg4: memref<16x1xf32, #tpu.memory_space<vmem>>, %arg5: memref<1x16x256xf32, #tpu.memory_space<vmem>>) attributes {dimension_semantics = [#tpu.dimension_semantics<parallel>, #tpu.dimension_semantics<parallel>], iteration_bounds = array<i64: 2, 1>, scalar_prefetch = 0 : i64, scratch_operands = 0 : i64, tpu.core_type = #tpu.core_type<tc>, window_params = [{transform_indices = @transform_0, window_bounds = array<i64: 1, 8, 256>}, {pipeline_mode = #tpu.pipeline_mode<synchronous>, transform_indices = @transform_1, window_bounds = array<i64: 16, 8>}, {pipeline_mode = #tpu.pipeline_mode<synchronous>, transform_indices = @transform_2, window_bounds = array<i64: 16, 1>}, {transform_indices = @transform_3, window_bounds = array<i64: 1, 16, 256>}]} {
    %c0 = arith.constant 0 : index
    %c0_0 = arith.constant 0 : index
    %0 = vector.load %arg3[%c0, %c0_0] : memref<16x8xf32, #tpu.memory_space<vmem>>, vector<16x8xf32>
    %c0_1 = arith.constant 0 : index
    %c0_2 = arith.constant 0 : index
    %c0_3 = arith.constant 0 : index
    %1 = vector.load %arg2[%c0_1, %c0_2, %c0_3] : memref<1x8x256xf32, #tpu.memory_space<vmem>>, vector<1x8x256xf32>
    %2 = vector.shape_cast %1 : vector<1x8x256xf32> to vector<8x256xf32>
    %cst = arith.constant dense<0.000000e+00> : vector<16x256xf32>
    %3 = tpu.matmul %0, %2, %cst {dimension_numbers = #tpu.dot_dimension_numbers<[1], [0], [0], [1], [0, 0, 1, 1], [], []>} : vector<16x8xf32>, vector<8x256xf32>, vector<16x256xf32> -> vector<16x256xf32>
    %c0_4 = arith.constant 0 : index
    %c0_5 = arith.constant 0 : index
    %4 = vector.load %arg4[%c0_4, %c0_5] : memref<16x1xf32, #tpu.memory_space<vmem>>, vector<16x1xf32>
    %5 = vector.broadcast %4 : vector<16x1xf32> to vector<16x256xf32>
    %6 = arith.addf %3, %5 : vector<16x256xf32>
    %c0_6 = arith.constant 0 : index
    %c0_7 = arith.constant 0 : index
    %c0_8 = arith.constant 0 : index
    %7 = vector.load %arg5[%c0_6, %c0_7, %c0_8] : memref<1x16x256xf32, #tpu.memory_space<vmem>>, vector<1x16x256xf32>
    %8 = vector.shape_cast %7 : vector<1x16x256xf32> to vector<16x256xf32>
    %9 = vector.shape_cast %6 : vector<16x256xf32> to vector<1x16x256xf32>
    tpu.vector_store %arg5[%c0_6, %c0_7, %c0_8], %9 {strides = array<i32>} : memref<1x16x256xf32, #tpu.memory_space<vmem>>, vector<1x16x256xf32>,
    return
  }
  func.func @transform_0(%arg0: i32, %arg1: i32) -> (i32, i32, i32) {
    %c0_i32 = arith.constant 0 : i32
    %c0_i32_0 = arith.constant 0 : i32
    return %arg0, %c0_i32, %arg1 : i32, i32, i32
  }
  func.func @transform_1(%arg0: i32, %arg1: i32) -> (i32, i32) {
    %c0_i32 = arith.constant 0 : i32
    %c0_i32_0 = arith.constant 0 : i32
    %c0_i32_1 = arith.constant 0 : i32
    return %c0_i32, %c0_i32_0 : i32, i32
  }
  func.func @transform_2(%arg0: i32, %arg1: i32) -> (i32, i32) {
    %c0_i32 = arith.constant 0 : i32
    %c0_i32_0 = arith.constant 0 : i32
    %c0_i32_1 = arith.constant 0 : i32
    return %c0_i32, %c0_i32_0 : i32, i32
  }
  func.func @transform_3(%arg0: i32, %arg1: i32) -> (i32, i32, i32) {
    %c0_i32 = arith.constant 0 : i32
    %c0_i32_0 = arith.constant 0 : i32
    return %arg0, %c0_i32, %arg1 : i32, i32, i32
  }
}

</mosaic_0001>

<bundles_post_ra>
// kernel: _lambda_.1
= control target key start
LH: loop header
LB: loop body
LE: loop exit
PB: predicated region body
PF: predicated region fallthrough
CT: control target
= control target key end

     0   :  { %s460_s12 = smov 0   ;;  %s462_s13 = smov 0   ;;  %s505_s0 = inlined_call_operand.vmem [shape: f32[2,8,256], index: 0, kind: input, shape index: {}]   ;;  %s506_s1 = inlined_call_operand.vmem [shape: f32[16,8], index: 1, kind: input, shape index: {}]   ;;  %s507_s2 = inlined_call_operand.vmem [shape: f32[16,1], index: 2, kind: input, shape index: {}]   ;;  %s508_s3 = inlined_call_operand.vmem [shape: f32[2,16,256], index: 3, kind: output, shape index: {}]  }
   0x1   :  { %s464_s14 = smov 0  }
   0x2 LB: > { %s25_s15 = sadd.s32 1, %s433_s13  ;;  %p374_p0 = scmp.ge.s32.totalorder %s437_s14, 1  ;;  %s437_s14 = sphi %s464_s14, %s13_s14   ;;  %s433_s13 = sphi %s462_s13, %s510_s13   ;;  %s429_s12 = sphi %s460_s12, %s509_s12  }
   0x3   : > { %p27_p1 = scmp.ge.s32.totalorder %s25_s15, 2  ;;  %p158_p2 = scmp.lt.s32.totalorder %s437_s14, 3 }
   0x5   : > { %s512_s15 = smov (%p27_p1, %s25_s15), 0  ;;  %p159_p3 = pnand %p374_p0, %p158_p2 }
   0x6   : > { %p191_p4 = scmp.lt.s32.totalorder (!%p159_p3), %s429_s12, 1 }
   0x7   : > { %162 = sbr.rel (%p159_p3) target bundleno = 154 (0x9a), region = 32 }
   0xc   : > { %v214_v0 = vld [vmem:[%s507_s2] sm:$0xff]  ;;  %v439_v1 = vmov 0   ;;  %s514_s12 = smov (!%p191_p4, %s429_s12), 1  ;;  %vm226_vm0 = vcmask 64512   ;;  %v211_v5 = vld [vmem:[%s506_s1 + $0x8] sm:$0xff] }
   0xd   : > { %414 = vset.pattern.permute.xlu0 %v439_v1  ;;  %s385_s18 = sshll.u32 %s514_s12, 4  ;;  %v210_v2 = vld [vmem:[%s506_s1] sm:$0xff]  ;;  %v215_v6 = vld [vmem:[%s507_s2 + $0x8] sm:$0xff]  ;;  %s386_s28 = sshll.u32 %s514_s12, 5 }
   0xe   : > { %218 = vperm.xlu0 %414, %v214_v0   ;;  %s198_s21 = scalar_lea.vmem %s505_s0, %s385_s18  ;;  %s208_s4 = scalar_lea.vmem %s508_s3, %s386_s28 }
   0xf   : > { %v212_v3 = vld [vmem:[%s198_s21] sm:$0xff]  ;;  %v213_v4 = vld [vmem:[%s198_s21 + $0x8] sm:$0xff] }
  0x10   : > { %248 = vmatpush.msra.mxu0 %v212_v3  ;;  %387 = vmatpush.msra.mxu2 %v212_v3 }
  0x11   : > { %271 = vmatpush.msra.mxu1 %v213_v4  ;;  %388 = vmatpush.msra.mxu3 %v213_v4 }
  0x12   : > { %379 = vmatmul.msk.f32.vlgmr.msra.gmra.mxu0 %vm226_vm0, %v210_v2  ;;  %380 = vmatmul.msk.f32.vlgmr.msra.gmra.mxu2 %vm226_vm0, %v211_v5 }
  0x13   : > { %381 = vmatmul.msk.f32.vlgmr.msra.gmra.mxu1 %vm226_vm0, %v210_v2  ;;  %382 = vmatmul.msk.f32.vlgmr.msra.gmra.mxu3 %vm226_vm0, %v211_v5 }
  0x16   : > { %223 = vperm.xlu0 %414, %v215_v6  }
  0x80   : > { %v219_v7 = vpop.permute.xlu0 %218 }
  0x88   : > { %v224_v12 = vpop.permute.xlu0 %223 }
  0x8f   : > { %v250_v8 = vpop.f32.mrf.mxu0 }
  0x90   : > { %v251_v9 = vadd.f32 %v250_v8, %v219_v7  ;;  %v273_v10 = vpop.f32.mrf.mxu1 }
  0x91   : > { %v274_v11 = vadd.f32 %v273_v10, %v219_v7 }
  0x92   : > { %279 = vst [vmem:[%s208_s4] sm:$0xff] %v251_v9 }
  0x93   : > { %280 = vst [vmem:[%s208_s4 + $0x8] sm:$0xff] %v274_v11 }
  0x95   : > { %v253_v13 = vpop.f32.mrf.mxu2 }
  0x96   : > { %v254_v14 = vadd.f32 %v253_v13, %v224_v12  ;;  %v276_v15 = vpop.f32.mrf.mxu3 }
  0x97   : > { %v277_v16 = vadd.f32 %v276_v15, %v224_v12 }
  0x98   : > { %281 = vst [vmem:[%s208_s4 + $0x10] sm:$0xff] %v254_v14 }
  0x99   : > { %282 = vst [vmem:[%s208_s4 + $0x18] sm:$0xff] %v277_v16 }
  0x9a PF: > { %s13_s14 = sadd.s32 1, %s437_s14   ;;  %s509_s12 = smov %s433_s13 }
  0x9b   : > { %p10_p5 = scmp.ge.s32.totalorder %s13_s14, 4   ;;  %s510_s13 = smov %s512_s15 }
  0x9d   :  { %12 = sbr.rel (!%p10_p5) target bundleno = 2 (0x2), region = 62 }

</bundles_post_ra>
